<compile_context>
chip_gen: v7x
topology: tpu7x:2x2x1
jax: 0.10.0
libtpu: 0.0.40
codegen_flags: <defaults>
</compile_context>

<pallas_src>
import functools

import jax
import jax.numpy as jnp
from jax import lax
from jax.experimental import pallas as pl
from jax.experimental.pallas import tpu as pltpu


# ---------------------------------------------------------------------------
# Pallas kernel: row-tiled GEMM + bias  (fused conv1+conv2 hot path)
# ---------------------------------------------------------------------------
def _gemm_bias_kernel(x_ref, w_ref, b_ref, o_ref):
    # x_ref: (TM, K)  w_ref: (K, N)  b_ref: (1, N) f32  o_ref: (TM, N)
    acc = jnp.dot(x_ref[...], w_ref[...], preferred_element_type=jnp.float32)
    o_ref[...] = (acc + b_ref[...]).astype(o_ref.dtype)


def _cdiv(a, b):
    return -(-a // b)


def _round_up(a, m):
    return _cdiv(a, m) * m


def _round_down(a, m):
    return (a // m) * m


def _is_v7x():
    try:
        return "v7" in jax.devices()[0].device_kind.lower()
    except Exception:  # no TPU visible at trace time
        return False


def _choose_row_tile(mp, kp, n_out, in_itemsize, out_itemsize, row_align,
                     *, vmem_budget_bytes, cap):
    """Row tile for an (mp, kp) x (kp, n_out) GEMM.

    Budget: double-buffered activation + output tiles plus the VMEM-resident
    weight/bias must fit `vmem_budget_bytes` (chosen so it also fits v7x's
    64 MiB VMEM with headroom).  Prefers a single full-extent block / an even
    split so no HBM padding pass is needed.  The forced 2-step split is gated
    to v7x (2 TensorCores); v5e/v6e have one TC and extra steps only add
    ~0.35us per-step pipeline overhead.
    """
    per_row = 2 * kp * in_itemsize + 2 * n_out * out_itemsize   # dbl-buffered tiles
    fixed = kp * n_out * in_itemsize + n_out * 4                # resident W + bias
    vmem_rows = max(row_align, (vmem_budget_bytes - fixed) // max(per_row, 1))
    max_rows = max(row_align, min(cap, _round_down(vmem_rows, row_align)))

    if mp <= max_rows:
        # Whole M in one block (full-extent blocks are always layout-legal).
        # On v7x split in two only when the split is exact (no padding needed).
        if _is_v7x() and mp % (2 * row_align) == 0:
            return mp // 2
        return mp

    steps = _cdiv(mp, max_rows)
    if _is_v7x() and steps % 2:
        steps += 1                       # even step count -> both TCs stay busy
    return min(max_rows, _round_up(_cdiv(mp, steps), row_align))


def gemm_bias(x, w, b, *, out_dtype=None, vmem_budget_bytes=20 << 20,
              max_row_tile=4096):
    """(M, K) @ (K, N) + b, f32 accumulation, row-tiled on the MXU."""
    M, K = x.shape
    Kw, N = w.shape
    assert Kw == K
    out_dtype = out_dtype or x.dtype

    in_itemsize = jnp.dtype(x.dtype).itemsize
    out_itemsize = jnp.dtype(out_dtype).itemsize
    # Sub-32-bit dtypes pack along sublanes: 16-row alignment for bf16, 32 for 8-bit.
    row_align = max(8, 32 // min(in_itemsize, out_itemsize))

    tm = _choose_row_tile(M, K, N, in_itemsize, out_itemsize, row_align,
                          vmem_budget_bytes=vmem_budget_bytes, cap=max_row_tile)
    m_pad = _cdiv(M, tm) * tm
    if m_pad != M:
        # Rare (tile chosen to divide / split evenly when possible); when it does
        # happen the pad is part of the producer chain offered to XLA for input
        # fusion below, so it usually does not cost an extra HBM pass.
        x = jnp.pad(x, ((0, m_pad - M), (0, 0)))

    b2d = b.reshape(1, N).astype(jnp.float32)
    grid = (m_pad // tm,)

    cost = pl.CostEstimate(
        flops=2 * m_pad * K * N,
        transcendentals=0,
        bytes_accessed=(m_pad * K + K * N) * in_itemsize + N * 4
        + m_pad * N * out_itemsize,
    )

    out = pl.pallas_call(
        _gemm_bias_kernel,
        out_shape=jax.ShapeDtypeStruct((m_pad, N), out_dtype),
        grid_spec=pltpu.PrefetchScalarGridSpec(
            num_scalar_prefetch=0,
            grid=grid,
            in_specs=[
                pl.BlockSpec((tm, K), lambda i: (i, 0)),  # activation row tile
                pl.BlockSpec((K, N), lambda i: (0, 0)),   # weight: VMEM-resident
                pl.BlockSpec((1, N), lambda i: (0, 0)),   # bias:   VMEM-resident
            ],
            out_specs=pl.BlockSpec((tm, N), lambda i: (i, 0)),
        ),
        compiler_params=pltpu.CompilerParams(
            dimension_semantics=("parallel",),
            vmem_limit_bytes=32 << 20,
            # Allow XLA to fuse the wrapper-side patchify transpose / dtype cast
            # / (rare) pad into the activation operand instead of materializing
            # it in HBM (roughly halves HBM traffic for this mem-bound GEMM).
            allow_input_fusion=[True, False, False],
        ),
        cost_estimate=cost,
    )(x, w, b2d)
    return out[:M] if m_pad != M else out


# ---------------------------------------------------------------------------
# PatchEmbedConnV0 forward (Pallas-backed, single fused GEMM)
# ---------------------------------------------------------------------------
def patch_embed_conn_v0(x, w1, b1, w2, b2, patch_size, *, compute_dtype=None):
    """
    x : (B, C, H, W)  NCHW, as in PyTorch
    w1: (E, C, 1, p)  conv1 weight    b1: (E,)
    w2: (E, E, p, 1)  conv2 weight    b2: (E,)
    compute_dtype: e.g. jnp.bfloat16 for bf16 MXU inputs (f32 accumulation and
                   f32 output) -- valid on v5e/v6e/v7x, halves activation HBM bytes.
    returns: (B, (H//p)*(W//p), E)    (norm_layer=None -> Identity)
    """
    B, C, H, W = x.shape
    E = w1.shape[0]
    p = patch_size
    orig_dtype = x.dtype

    # PyTorch strided Conv2d silently drops remainder rows/cols.
    Hc, Wc = (H // p) * p, (W // p) * p
    if (Hc, Wc) != (H, W):
        x = x[:, :, :Hc, :Wc]
    Hp, Wp = Hc // p, Wc // p
    M = B * Hp * Wp
    K = p * C * p

    # ---- fuse conv1 (1,p) + conv2 (p,1) into one (p*p*C -> E) projection ----
    w1r = w1[:, :, 0, :]                       # (E, C, k)
    w2r = w2[:, :, :, 0]                       # (F, E, r)
    w_fused = jnp.einsum("fer,eck->rckf", w2r, w1r).reshape(K, E)   # f32
    b_fused = (b2 + jnp.einsum("fer,e->f", w2r, b1)).astype(jnp.float32)

    if compute_dtype is not None:
        x = x.astype(compute_dtype)            # cast BEFORE patchify: halves its bytes
        w_fused = w_fused.astype(compute_dtype)

    # ---- patchify: rows = (b, hp, wp), cols = (r, c, k) ----
    # Single XLA transpose; offered to the kernel for input fusion (no HBM copy).
    xp = (x.reshape(B, C, Hp, p, Wp, p)
           .transpose(0, 2, 4, 3, 1, 5)        # (B, Hp, Wp, r, C, k)
           .reshape(M, K))

    # ---- lane-dense output packing: P logical rows per GEMM row when E < 128 ----
    P = 128 // E if (E < 128 and 128 % E == 0) else 1
    if P > 1 and M % P == 0:
        xp = xp.reshape(M // P, P * K)                       # free (contiguous rows)
        w_gemm = jnp.kron(jnp.eye(P, dtype=w_fused.dtype), w_fused)  # (P*K, P*E) blkdiag
        b_gemm = jnp.tile(b_fused, P)                        # (P*E,)
    else:
        P = 1
        w_gemm, b_gemm = w_fused, b_fused

    out = gemm_bias(xp, w_gemm, b_gemm, out_dtype=orig_dtype)
    out = out.reshape(M, E)                                  # free (contiguous rows)
    return out.reshape(B, Hp * Wp, E)


# ---------------------------------------------------------------------------
# Pure-JAX reference (lax.conv), mirrors the PyTorch forward exactly
# ---------------------------------------------------------------------------
def reference_forward(x, w1, b1, w2, b2, patch_size):
    dn = ("NCHW", "OIHW", "NCHW")
    y = lax.conv_general_dilated(x, w1, window_strides=(1, patch_size),
                                 padding="VALID", dimension_numbers=dn)
    y = y + b1.reshape(1, -1, 1, 1)
    z = lax.conv_general_dilated(y, w2, window_strides=(patch_size, 1),
                                 padding="VALID", dimension_numbers=dn)
    z = z + b2.reshape(1, -1, 1, 1)
    B, E = z.shape[0], z.shape[1]
    return z.reshape(B, E, -1).transpose(0, 2, 1)


if __name__ == "__main__":
    # Small shapes consistent with the module: num_node=16, patch_size=4,
    # in_chans=4, embed_dim=32, batch=2.
    B, C, H, W = 2, 4, 16, 16
    patch_size = 4
    E = 32

    key = jax.random.PRNGKey(0)
    kx, k1, k2, k3, k4 = jax.random.split(key, 5)

    x = jax.random.normal(kx, (B, C, H, W), dtype=jnp.float32)
    w1 = jax.random.normal(k1, (E, C, 1, patch_size), dtype=jnp.float32) * 0.1
    b1 = jax.random.normal(k2, (E,), dtype=jnp.float32) * 0.1
    w2 = jax.random.normal(k3, (E, E, patch_size, 1), dtype=jnp.float32) * 0.1
    b2 = jax.random.normal(k4, (E,), dtype=jnp.float32) * 0.1

    expected_shape = (B, (H // patch_size) * (W // patch_size), E)
    ref = reference_forward(x, w1, b1, w2, b2, patch_size)

    # f32 path (strict check).
    fwd = jax.jit(functools.partial(patch_embed_conn_v0, patch_size=patch_size))
    out = jax.block_until_ready(fwd(x, w1, b1, w2, b2))
    assert out.shape == expected_shape, (out.shape, expected_shape)
    err = float(jnp.max(jnp.abs(out - ref)))
    assert jnp.allclose(out, ref, atol=1e-4, rtol=1e-4), err

    # bf16-MXU path (valid on v5e/v6e/v7x; f32 accumulation & output).
    fwd_bf16 = jax.jit(functools.partial(
        patch_embed_conn_v0, patch_size=patch_size, compute_dtype=jnp.bfloat16))
    out_bf16 = jax.block_until_ready(fwd_bf16(x, w1, b1, w2, b2))
    assert out_bf16.shape == expected_shape
    err_bf16 = float(jnp.max(jnp.abs(out_bf16 - ref)))
    assert jnp.allclose(out_bf16, ref, atol=5e-2, rtol=5e-2), err_bf16

    print("KERNEL_OK")
</pallas_src>

<mosaic_0001>
module attributes {stable_mosaic.version = 11 : i64} {
  func.func @_gemm_bias_kernel(%arg0: i32, %arg1: memref<8x256xf32, #tpu.memory_space<vmem>>, %arg2: memref<256x128xf32, #tpu.memory_space<vmem>>, %arg3: memref<1x128xf32, #tpu.memory_space<vmem>>, %arg4: memref<8x128xf32, #tpu.memory_space<vmem>>) attributes {dimension_semantics = [#tpu.dimension_semantics<parallel>], iteration_bounds = array<i64: 1>, scalar_prefetch = 0 : i64, scratch_operands = 0 : i64, tpu.core_type = #tpu.core_type<tc>, window_params = [{transform_indices = @transform_0, window_bounds = array<i64: 8, 256>}, {pipeline_mode = #tpu.pipeline_mode<synchronous>, transform_indices = @transform_1, window_bounds = array<i64: 256, 128>}, {pipeline_mode = #tpu.pipeline_mode<synchronous>, transform_indices = @transform_2, window_bounds = array<i64: 1, 128>}, {transform_indices = @transform_3, window_bounds = array<i64: 8, 128>}]} {
    %c0 = arith.constant 0 : index
    %c0_0 = arith.constant 0 : index
    %0 = vector.load %arg1[%c0, %c0_0] : memref<8x256xf32, #tpu.memory_space<vmem>>, vector<8x256xf32>
    %c0_1 = arith.constant 0 : index
    %c0_2 = arith.constant 0 : index
    %1 = vector.load %arg2[%c0_1, %c0_2] : memref<256x128xf32, #tpu.memory_space<vmem>>, vector<256x128xf32>
    %cst = arith.constant dense<0.000000e+00> : vector<8x128xf32>
    %2 = tpu.matmul %0, %1, %cst {dimension_numbers = #tpu.dot_dimension_numbers<[1], [0], [0], [1], [0, 0, 1, 1], [], []>} : vector<8x256xf32>, vector<256x128xf32>, vector<8x128xf32> -> vector<8x128xf32>
    %c0_3 = arith.constant 0 : index
    %c0_4 = arith.constant 0 : index
    %3 = vector.load %arg3[%c0_3, %c0_4] : memref<1x128xf32, #tpu.memory_space<vmem>>, vector<1x128xf32>
    %4 = vector.broadcast %3 : vector<1x128xf32> to vector<8x128xf32>
    %5 = arith.addf %2, %4 : vector<8x128xf32>
    %c0_5 = arith.constant 0 : index
    %c0_6 = arith.constant 0 : index
    %6 = vector.load %arg4[%c0_5, %c0_6] : memref<8x128xf32, #tpu.memory_space<vmem>>, vector<8x128xf32>
    tpu.vector_store %arg4[%c0_5, %c0_6], %5 {strides = array<i32>} : memref<8x128xf32, #tpu.memory_space<vmem>>, vector<8x128xf32>,
    return
  }
  func.func @transform_0(%arg0: i32) -> (i32, i32) {
    %c0_i32 = arith.constant 0 : i32
    %c0_i32_0 = arith.constant 0 : i32
    return %arg0, %c0_i32 : i32, i32
  }
  func.func @transform_1(%arg0: i32) -> (i32, i32) {
    %c0_i32 = arith.constant 0 : i32
    %c0_i32_0 = arith.constant 0 : i32
    %c0_i32_1 = arith.constant 0 : i32
    return %c0_i32, %c0_i32_0 : i32, i32
  }
  func.func @transform_2(%arg0: i32) -> (i32, i32) {
    %c0_i32 = arith.constant 0 : i32
    %c0_i32_0 = arith.constant 0 : i32
    %c0_i32_1 = arith.constant 0 : i32
    return %c0_i32, %c0_i32_0 : i32, i32
  }
  func.func @transform_3(%arg0: i32) -> (i32, i32) {
    %c0_i32 = arith.constant 0 : i32
    %c0_i32_0 = arith.constant 0 : i32
    return %arg0, %c0_i32 : i32, i32
  }
}

</mosaic_0001>

<bundles_post_ra>
// kernel: tile.8
= control target key start
LH: loop header
LB: loop body
LE: loop exit
PB: predicated region body
PF: predicated region fallthrough
CT: control target
= control target key end

     0   :  { %s22_s0 = inlined_call_operand.vmem [shape: f32[32], index: 0, kind: input, shape index: {}]   ;;  %s23_s1 = inlined_call_operand.vmem [shape: f32[4,32], index: 1, kind: output, shape index: {}]  }
   0x1   :  { %v4_v0 = vld [vmem:[%s22_s0] ss:$0 sm:$0xff] }
   0x2   :  { %5 = vst [vmem:[%s23_s1] sm:$0xf] %v4_v0 }

// kernel: tile.9
= control target key start
LH: loop header
LB: loop body
LE: loop exit
PB: predicated region body
PF: predicated region fallthrough
CT: control target
= control target key end

     0   :  { %vm7_vm0 = vcmask 261120   ;;  %s37_s8 = smov 32   ;;  %s38_s9 = smov 64   ;;  %vm13_vm1 = vcmask 1048320   ;;  %vm19_vm2 = vcmask 785920   ;;  %vm25_vm3 = vcmask 523520   ;;  %s55_s0 = inlined_call_operand.vmem [shape: f32[4,32], index: 0, kind: input, shape index: {}]   ;;  %s56_s1 = inlined_call_operand.vmem [shape: f32[1,128], index: 1, kind: output, shape index: {}]  }
   0x1   :  { %v4_v0 = vld [vmem:[%s55_s0] sm:$0xf]  ;;  %s36_s0 = smov 96  }
   0x2   :  { %5 = vst [vmem:[#allocation1] sm:$0xf] %v4_v0 }
   0x9   :  { %v10_v1 = vld [vmem:[#allocation1 + $0x3] sm:$0x1]   ;;  %v22_v2 = vld [vmem:[#allocation1 + $0x1] sm:$0x1]   ;;  %v6_v3 = vld [vmem:[#allocation1] sm:$0x1]  }
   0xa   :  { %11 = vrot.lane.b32.xlu0 %v10_v1, %s36_s0  ;;  %23 = vrot.lane.b32.xlu1 %v22_v2, %s37_s8  ;;  %v16_v4 = vld [vmem:[#allocation1 + $0x2] sm:$0x1]   ;;  %8 = vst.msk [vmem:[#allocation0] sm:$0x1] %vm7_vm0, %v6_v3  }
   0xe   :  { %17 = vrot.lane.b32.xlu0 %v16_v4, %s38_s9 }
  0x7c   :  { %v12_v5 = vpop.permute.xlu0 %11   ;;  %v24_v6 = vpop.permute.xlu1 %23  }
  0x7d   :  { %14 = vst.msk [vmem:[#allocation0] sm:$0x1] %vm13_vm1, %v12_v5  }
  0x80   :  { %v18_v7 = vpop.permute.xlu0 %17  }
  0x81   :  { %20 = vst.msk [vmem:[#allocation0] sm:$0x1] %vm19_vm2, %v18_v7  }
  0x82   :  { %26 = vst.msk [vmem:[#allocation0] sm:$0x1] %vm25_vm3, %v24_v6  }
  0x89   :  { %v30_v8 = vld [vmem:[#allocation0] sm:$0x1] }
  0x8a   :  { %32 = vst [vmem:[%s56_s1] sm:$0x1] %v30_v8 }

// kernel: patch_embed_conn_v0.1
= control target key start
LH: loop header
LB: loop body
LE: loop exit
PB: predicated region body
PF: predicated region fallthrough
CT: control target
= control target key end

     0   :  { %s326_s1 = inlined_call_operand.vmem [shape: f32[256,128], index: 1, kind: input, shape index: {}]   ;;  %s327_s0 = inlined_call_operand.vmem [shape: f32[8,256], index: 0, kind: input, shape index: {}]   ;;  %s328_s2 = inlined_call_operand.vmem [shape: f32[1,128], index: 2, kind: input, shape index: {}]   ;;  %s329_s3 = inlined_call_operand.vmem [shape: f32[8,128], index: 3, kind: output, shape index: {}]  }
   0x1   :  { %v32_v0 = vld [vmem:[%s326_s1 + $0x80] sm:$0xff]  ;;  %v33_v1 = vld [vmem:[%s326_s1 + $0x88] sm:$0xff]  ;;  %v34_v5 = vld [vmem:[%s326_s1 + $0x90] sm:$0xff] }
   0x2   :  { %v16_v2 = vld [vmem:[%s326_s1] sm:$0xff]  ;;  %v166_v3 = vpack.c.bf16 %v33_v1, %v32_v0  ;;  %v17_v4 = vld [vmem:[%s326_s1 + $0x8] sm:$0xff]  ;;  %v35_v6 = vld [vmem:[%s326_s1 + $0x98] sm:$0xff] }
   0x3   :  { %v168_v7 = vpack.c.bf16 %v17_v4, %v16_v2  ;;  %v170_v8 = vpack.c.bf16 %v35_v6, %v34_v5  ;;  %v18_v9 = vld [vmem:[%s326_s1 + $0x10] sm:$0xff]  ;;  %v19_v10 = vld [vmem:[%s326_s1 + $0x18] sm:$0xff]  ;;  %v36_v11 = vld [vmem:[%s326_s1 + $0xa0] sm:$0xff] }
   0x4   :  { %167 = vmatprep.subr.bf16.mxu0 %v166_v3  ;;  %v37_v12 = vld [vmem:[%s326_s1 + $0xa8] sm:$0xff]  ;;  %v172_v13 = vpack.c.bf16 %v19_v10, %v18_v9  ;;  %v20_v15 = vld [vmem:[%s326_s1 + $0x20] sm:$0xff]  ;;  %v38_v17 = vld [vmem:[%s326_s1 + $0xb0] sm:$0xff] }
   0x5   :  { %169 = vmatpush3.bf16.msra.mxu0 %v168_v7  ;;  %v174_v14 = vpack.c.bf16 %v37_v12, %v36_v11  ;;  %v21_v16 = vld [vmem:[%s326_s1 + $0x28] sm:$0xff]  ;;  %v39_v18 = vld [vmem:[%s326_s1 + $0xb8] sm:$0xff]  ;;  %v22_v21 = vld [vmem:[%s326_s1 + $0x30] sm:$0xff] }
   0x6   :  { %171 = vmatprep.subr.bf16.mxu0 %v170_v8  ;;  %v176_v19 = vpack.c.bf16 %v21_v16, %v20_v15  ;;  %v178_v20 = vpack.c.bf16 %v39_v18, %v38_v17  ;;  %v23_v22 = vld [vmem:[%s326_s1 + $0x38] sm:$0xff]  ;;  %v40_v23 = vld [vmem:[%s326_s1 + $0xc0] sm:$0xff]  ;;  %v41_v24 = vld [vmem:[%s326_s1 + $0xc8] sm:$0xff] }
   0x7   :  { %v15_v25 = vld [vmem:[%s327_s0 + $0x8] sm:$0xff]  ;;  %v180_v26 = vpack.c.bf16 %v23_v22, %v22_v21  ;;  %v182_v27 = vpack.c.bf16 %v41_v24, %v40_v23  ;;  %v24_v28 = vld [vmem:[%s326_s1 + $0x40] sm:$0xff]  ;;  %v42_v30 = vld [vmem:[%s326_s1 + $0xd0] sm:$0xff] }
   0x8   :  { %119 = vmatprep.mubr.f32.mxu0 %v15_v25  ;;  %v25_v29 = vld [vmem:[%s326_s1 + $0x48] sm:$0xff]  ;;  %v43_v31 = vld [vmem:[%s326_s1 + $0xd8] sm:$0xff]  ;;  %v26_v34 = vld [vmem:[%s326_s1 + $0x50] sm:$0xff] }
   0x9   :  { %173 = vmatpush3.bf16.msra.mxu0 %v172_v13  ;;  %v184_v32 = vpack.c.bf16 %v25_v29, %v24_v28  ;;  %v186_v33 = vpack.c.bf16 %v43_v31, %v42_v30  ;;  %v27_v35 = vld [vmem:[%s326_s1 + $0x58] sm:$0xff]  ;;  %v44_v36 = vld [vmem:[%s326_s1 + $0xe0] sm:$0xff]  ;;  %v45_v37 = vld [vmem:[%s326_s1 + $0xe8] sm:$0xff] }
   0xa   :  { %175 = vmatprep.subr.bf16.mxu0 %v174_v14  ;;  %v188_v38 = vpack.c.bf16 %v27_v35, %v26_v34  ;;  %v190_v39 = vpack.c.bf16 %v45_v37, %v44_v36  ;;  %v28_v40 = vld [vmem:[%s326_s1 + $0x60] sm:$0xff]  ;;  %v29_v41 = vld [vmem:[%s326_s1 + $0x68] sm:$0xff]  ;;  %v46_v42 = vld [vmem:[%s326_s1 + $0xf0] sm:$0xff] }
   0xb   :  { %v47_v43 = vld [vmem:[%s326_s1 + $0xf8] sm:$0xff]  ;;  %v192_v44 = vpack.c.bf16 %v29_v41, %v28_v40  ;;  %v30_v46 = vld [vmem:[%s326_s1 + $0x70] sm:$0xff]  ;;  %v14_v49 = vld [vmem:[%s327_s0] sm:$0xff] }
   0xc   :  { %v194_v45 = vpack.c.bf16 %v47_v43, %v46_v42  ;;  %v31_v47 = vld [vmem:[%s326_s1 + $0x78] sm:$0xff]  ;;  %v130_v51 = vld [vmem:[%s328_s2] ss:$0 sm:$0xff] }
   0xd   :  { %177 = vmatpush3.bf16.msra.mxu0 %v176_v19  ;;  %v196_v48 = vpack.c.bf16 %v31_v47, %v30_v46 }
   0xe   :  { %179 = vmatprep.subr.bf16.mxu0 %v178_v20 }
  0x11   :  { %181 = vmatpush3.bf16.msra.mxu0 %v180_v26 }
  0x12   :  { %183 = vmatprep.subr.bf16.mxu0 %v182_v27 }
  0x15   :  { %185 = vmatpush3.bf16.msra.mxu0 %v184_v32 }
  0x16   :  { %187 = vmatprep.subr.bf16.mxu0 %v186_v33 }
  0x19   :  { %189 = vmatpush3.bf16.msra.mxu0 %v188_v38 }
  0x1a   :  { %191 = vmatprep.subr.bf16.mxu0 %v190_v39 }
  0x1d   :  { %193 = vmatpush3.bf16.msra.mxu0 %v192_v44 }
  0x1e   :  { %195 = vmatprep.subr.bf16.mxu0 %v194_v45 }
  0x21   :  { %197 = vmatpush3.bf16.msra.mxu0 %v196_v48 }
  0x24   :  { %120 = vmatmul.mubr.f32.vlgmr.msra.gmra.mrb[0].mxu0 %v14_v49 }
  0xf7   :  { %v163_v50 = vpop.f32.mrb[0].mxu0 }
  0xf8   :  { %v164_v52 = vpop.f32.mrb[1].mxu0 }
  0xf9   :  { %v165_v53 = vadd.f32 %v164_v52, %v163_v50 }
  0xfb   :  { %v122_v54 = vadd.f32 %v165_v53, %v130_v51 }
  0xfd   :  { %125 = vst [vmem:[%s329_s3] sm:$0xff] %v122_v54 }

</bundles_post_ra>
